<compile_context>
chip_gen: v6e
topology: v6e:2x2x1
jax: 0.10.0
libtpu: 0.0.40
codegen_flags: <defaults>
</compile_context>

<pallas_src>
import functools
from typing import NamedTuple

import jax
import jax.numpy as jnp
from jax.experimental import pallas as pl
from jax.experimental.pallas import tpu as pltpu


# ----------------------------------------------------------------------------
# Generation-dependent perf knobs (correctness is identical on every path)
# ----------------------------------------------------------------------------
class _TpuTuning(NamedTuple):
    max_tile: int           # lane-dense HW tile cap (multiple of 128)
    vmem_limit_bytes: int   # scoped-VMEM request for the pallas_call
    bf16_eup: bool          # run tanh / CFG mix in bf16 (v6e/v7x have bf16 EUP/VPU)


def _tpu_tuning() -> _TpuTuning:
    kind = ""
    try:
        kind = jax.devices()[0].device_kind.lower()
    except Exception:  # defensive: keep conservative defaults
        pass
    if "v7" in kind:
        # 64 MiB physical VMEM per TC: smaller tile, modest scoped-VMEM request.
        return _TpuTuning(max_tile=16384, vmem_limit_bytes=48 << 20, bf16_eup=True)
    if "v6" in kind:
        return _TpuTuning(max_tile=32768, vmem_limit_bytes=96 << 20, bf16_eup=True)
    if "v5" in kind:
        # 128 MiB VMEM but no bf16 VPU/EUP -> keep tanh/mix in f32.
        return _TpuTuning(max_tile=32768, vmem_limit_bytes=96 << 20, bf16_eup=False)
    return _TpuTuning(max_tile=8192, vmem_limit_bytes=48 << 20, bf16_eup=False)


# ----------------------------------------------------------------------------
# Pallas kernel: one (batch, HW-tile) cell per grid step.  Lane-dense layout:
# activations are [C, THW] / [Hd, THW] with HW on the 128-lane axis.
# ----------------------------------------------------------------------------
def _cfg_denoiser_kernel(sigma_ref,          # SMEM [B]            f32
                         x_ref,              # VMEM [1, C, THW]    f32
                         cp_ref,             # VMEM [1, Hd, R]     f32  (wp^T @ emb + b1)
                         w1t_ref,            # VMEM [Hd, C]        bf16
                         w2t_ref,            # VMEM [C, Hd]        bf16
                         b2_ref,             # VMEM [C, 1]         f32
                         out_ref,            # VMEM [1, C, THW]    f32
                         *, alphas, bf16_eup):
    b = pl.program_id(0)

    x = x_ref[0]                                         # [C, THW]  f32
    sigma = sigma_ref[b]                                 # scalar from SMEM
    c_in = jax.lax.rsqrt(sigma * sigma + 1.0)            # CompVisDenoiser scalings
    c_out = -sigma

    xs = (x * c_in).astype(jnp.bfloat16)                 # bf16 only as MXU operand

    # Shared first layer — identical for every CFG slot, computed once.
    base = jnp.dot(w1t_ref[...], xs,
                   preferred_element_type=jnp.float32)   # [Hd, THW] f32

    cp = cp_ref[0]                                       # [Hd, R] f32 (b1 folded in)

    # tanh + CFG mix: bf16 on v6e/v7x (bf16 EUP/VPU), f32 on v5e.
    mix_dtype = jnp.bfloat16 if bf16_eup else jnp.float32
    base_m = base.astype(mix_dtype)
    cp_m = cp.astype(mix_dtype)

    # CFG mix folded through the linear output layer (alphas sum to 1):
    #   D_mix = x + c_out * ((sum_r a_r * tanh(base + cp_r)) @ w2 + b2)
    h_mix = alphas[0] * jnp.tanh(base_m + cp_m[:, 0:1])
    for r in range(1, len(alphas)):                      # static, <= 3 (VPU FMAs)
        h_mix = h_mix + alphas[r] * jnp.tanh(base_m + cp_m[:, r:r + 1])

    eps = jnp.dot(w2t_ref[...], h_mix.astype(jnp.bfloat16),
                  preferred_element_type=jnp.float32) + b2_ref[...]       # [C, THW]

    out_ref[0] = x + eps * c_out                         # D(x) residual form


# ----------------------------------------------------------------------------
# Wrapper (static CFG-mode dispatch, lane-dense layout, pallas_call)
# ----------------------------------------------------------------------------
def _cfg_alphas(cond_scale):
    """Static CFG mixing coefficients for (cond, uncond, ...) slots; sum to 1."""
    if not isinstance(cond_scale, (list, tuple)):
        s = float(cond_scale)
        if s > 1.0:
            return (s, 1.0 - s)                          # x_u + s * (x_c - x_u)
        return (1.0,)                                    # plain inner-model call
    s0, s1 = (float(v) for v in cond_scale)
    return (0.5 * (s0 + s1), 0.5 * (1.0 - s0), 0.5 * (1.0 - s1))


def _cond_projection(cond_emb, wp, b1, repeats):
    """[B, Hd, R] f32 conditioning projection with b1 folded in (tiny; host graph)."""
    emb = cond_emb[:, :repeats, :].astype(jnp.float32)                    # [B, R, D]
    proj = jnp.einsum("brd,dh->bhr", emb, jnp.asarray(wp, jnp.float32),
                      precision=jax.lax.Precision.HIGHEST)                # [B, Hd, R]
    return proj + jnp.asarray(b1, jnp.float32).reshape(1, -1, 1)


def _pick_hw_tile(hw_pad, max_tile):
    """Largest multiple-of-128 divisor of hw_pad that is <= max_tile."""
    cap = min(hw_pad, max(128, (max_tile // 128) * 128))
    for t in range(cap, 0, -128):
        if hw_pad % t == 0:
            return t
    return 128                                            # unreachable: 128 | hw_pad


def cfg_denoise(x_nchw, sigma, cond_emb, cond_scale, params, *, tuning=None):
    """x_nchw: [B, C, H, W]; sigma: [B]; cond_emb: [B, 3, D] (cond, uncond0, uncond1)."""
    alphas = _cfg_alphas(cond_scale)
    repeats = len(alphas)
    tuning = tuning or _tpu_tuning()

    B, C, H, W = x_nchw.shape
    HW = H * W
    x_flat = x_nchw.reshape(B, C, HW).astype(jnp.float32)      # free reshape (HW on lanes)

    # Pad HW to a multiple of 128 so every tile is lane-dense (unmasked vst)
    # and the tile picker always succeeds; padding is sliced off afterwards.
    hw_pad = ((HW + 127) // 128) * 128
    if hw_pad != HW:
        x_flat = jnp.pad(x_flat, ((0, 0), (0, 0), (0, hw_pad - HW)))

    w1, b1, wp, w2, b2 = params
    Hd = w1.shape[1]

    # Transposed weights for the [C, HW] activation layout; bf16 once (MXU
    # operands, half the HBM/VMEM traffic).  Biases / x / cproj stay f32.
    w1t = jnp.asarray(w1, jnp.float32).T.astype(jnp.bfloat16)             # [Hd, C]
    w2t = jnp.asarray(w2, jnp.float32).T.astype(jnp.bfloat16)             # [C, Hd]
    b2c = jnp.asarray(b2, jnp.float32).reshape(C, 1)                      # [C, 1]
    cproj = _cond_projection(cond_emb, wp, b1, repeats)                   # [B, Hd, R]

    thw = _pick_hw_tile(hw_pad, tuning.max_tile)
    grid = (B, hw_pad // thw)

    kernel = functools.partial(_cfg_denoiser_kernel, alphas=alphas,
                               bf16_eup=tuning.bf16_eup)

    out_flat = pl.pallas_call(
        kernel,
        out_shape=jax.ShapeDtypeStruct((B, C, hw_pad), jnp.float32),
        grid=grid,
        in_specs=[
            pl.BlockSpec(memory_space=pltpu.MemorySpace.SMEM),            # sigma [B]
            pl.BlockSpec((1, C, thw), lambda b, t: (b, 0, t)),            # x
            pl.BlockSpec((1, Hd, repeats), lambda b, t: (b, 0, 0)),       # cond projection
            pl.BlockSpec((Hd, C), lambda b, t: (0, 0)),                   # w1^T (resident)
            pl.BlockSpec((C, Hd), lambda b, t: (0, 0)),                   # w2^T (resident)
            pl.BlockSpec((C, 1), lambda b, t: (0, 0)),                    # b2
        ],
        out_specs=pl.BlockSpec((1, C, thw), lambda b, t: (b, 0, t)),
        compiler_params=pltpu.CompilerParams(
            dimension_semantics=("parallel", "parallel"),
            vmem_limit_bytes=tuning.vmem_limit_bytes),
    )(sigma.astype(jnp.float32), x_flat, cproj, w1t, w2t, b2c)

    if hw_pad != HW:
        out_flat = out_flat[:, :, :HW]
    return out_flat.reshape(B, C, H, W)                                   # free reshape


# ----------------------------------------------------------------------------
# Pure-JAX references for verification
# ----------------------------------------------------------------------------
def _matmul(a, b, mm_dtype, precision):
    return jnp.matmul(a.astype(mm_dtype), b.astype(mm_dtype),
                      preferred_element_type=jnp.float32, precision=precision)


def _inner_model(x_nchw, sigma, emb_slot, params, *, mm_dtype, precision=None):
    """Synthetic conditioned eps-predictor standing in for the CompVis UNet."""
    # TODO(synk): the real CompVisDenoiser wraps a full SD UNet; it is replaced
    # here by a conditioned per-pixel (1x1-conv style) MLP eps-predictor.
    w1, b1, wp, w2, b2 = params
    B, C, H, W = x_nchw.shape
    xf = jnp.transpose(x_nchw, (0, 2, 3, 1)).reshape(B, H * W, C)
    c_in = jax.lax.rsqrt(sigma * sigma + 1.0)[:, None, None]
    c_out = (-sigma)[:, None, None]
    xs = xf * c_in
    cproj = _matmul(emb_slot, wp, mm_dtype, precision)                    # [B, Hd]
    h = jnp.tanh(_matmul(xs, w1, mm_dtype, precision) + b1 + cproj[:, None, :])
    eps = _matmul(h, w2, mm_dtype, precision) + b2
    den = xf + eps * c_out
    return jnp.transpose(den.reshape(B, H, W, C), (0, 3, 1, 2))


def _reference_module(x, sigma, cond_emb, cond_scale, params, *, mm_dtype, precision=None):
    """Literal translation of CFGDenoiser.forward (per-repeat inner calls + mix)."""
    inner = lambda e: _inner_model(x, sigma, e, params,
                                   mm_dtype=mm_dtype, precision=precision)
    if not isinstance(cond_scale, (list, tuple)):
        if float(cond_scale) <= 1.0:
            return inner(cond_emb[:, 0])
        x_cond, x_uncond = inner(cond_emb[:, 0]), inner(cond_emb[:, 1])
        return x_uncond + (x_cond - x_uncond) * cond_scale
    x_cond = inner(cond_emb[:, 0])
    x_u0 = inner(cond_emb[:, 1])
    x_u1 = inner(cond_emb[:, 2])
    return (x_u0 + (x_cond - x_u0) * cond_scale[0]
            + x_u1 + (x_cond - x_u1) * cond_scale[1]) * 0.5


def _reference_folded(x, sigma, cond_emb, alphas, params, *, mm_dtype,
                      precision=None, bf16_eup=False):
    """Pure-JAX twin of the fused kernel math (hoisted layer 1, precomputed
    conditioning projection with b1 folded in, folded CFG mix)."""
    w1, b1, wp, w2, b2 = params
    B, C, H, W = x.shape
    R = len(alphas)
    xf = jnp.transpose(x, (0, 2, 3, 1)).reshape(B, H * W, C)
    c_in = jax.lax.rsqrt(sigma * sigma + 1.0)[:, None, None]
    c_out = (-sigma)[:, None, None]
    xs = xf * c_in
    base = _matmul(xs, w1, mm_dtype, precision)                           # [B, HW, Hd]
    cproj = jnp.einsum("brd,dh->brh", cond_emb[:, :R, :].astype(jnp.float32),
                       jnp.asarray(wp, jnp.float32),
                       precision=jax.lax.Precision.HIGHEST)
    cproj = cproj + jnp.asarray(b1, jnp.float32).reshape(1, 1, -1)        # [B, R, Hd]
    if bf16_eup:
        base = base.astype(jnp.bfloat16)
        cproj = cproj.astype(jnp.bfloat16)
    h_mix = alphas[0] * jnp.tanh(base + cproj[:, 0][:, None, :])
    for r in range(1, R):
        h_mix = h_mix + alphas[r] * jnp.tanh(base + cproj[:, r][:, None, :])
    eps = _matmul(h_mix, w2, mm_dtype, precision) + b2
    den = xf + eps * c_out
    return jnp.transpose(den.reshape(B, H, W, C), (0, 3, 1, 2))


# ----------------------------------------------------------------------------
if __name__ == "__main__":
    B, C, H, W = 2, 4, 16, 16        # latent-like small shape
    D, Hd = 32, 128                  # cond embedding dim / synthetic hidden dim

    key = jax.random.PRNGKey(0)
    kx, ke, k1, kb1, k2, k3, kb2 = jax.random.split(key, 7)

    x = jax.random.normal(kx, (B, C, H, W), dtype=jnp.float32)
    sigma = jnp.array([1.2, 0.7], dtype=jnp.float32)
    cond_emb = jax.random.normal(ke, (B, 3, D), dtype=jnp.float32)   # cond / uncond0 / uncond1

    # Deterministic synthetic inner-model parameters (stand-in for the UNet).
    params = (
        0.20 * jax.random.normal(k1, (C, Hd), dtype=jnp.float32),    # w1
        0.05 * jax.random.normal(kb1, (1, Hd), dtype=jnp.float32),   # b1 (folded into cproj)
        0.10 * jax.random.normal(k2, (D, Hd), dtype=jnp.float32),    # wp
        0.10 * jax.random.normal(k3, (Hd, C), dtype=jnp.float32),    # w2
        0.05 * jax.random.normal(kb2, (1, C), dtype=jnp.float32),    # b2
    )

    tuning = _tpu_tuning()
    # bf16 tanh/mix (v6e/v7x path) rounds transcendentals before the +-7.5
    # guidance amplification -> slightly looser kernel-vs-twin tolerance.
    tol = 5e-2 if tuning.bf16_eup else 2e-2

    for cond_scale in (7.5, [7.5, 3.0], 1.0):     # single CFG / dual CFG / no guidance
        alphas = _cfg_alphas(cond_scale)

        out = jax.block_until_ready(
            cfg_denoise(x, sigma, cond_emb, cond_scale, params, tuning=tuning))
        assert out.shape == (B, C, H, W)

        # (1) Kernel vs. a pure-JAX twin of the fused math at matched precision
        #     (bf16 MXU operands / f32 accumulation, same tanh/mix dtype):
        #     validates the Pallas implementation (layout, BlockSpecs, SMEM
        #     sigma, padding, CFG fusion).
        ref_k = _reference_folded(x, sigma, cond_emb, alphas, params,
                                  mm_dtype=jnp.bfloat16, bf16_eup=tuning.bf16_eup)
        assert jnp.allclose(out, ref_k, rtol=tol, atol=tol), \
            f"kernel mismatch @ cond_scale={cond_scale}"

        # (2) The algebraic CFG fold vs. the literal CFGDenoiser.forward
        #     structure, both in f32/highest precision: validates that the
        #     fused kernel math preserves the module's guidance semantics.
        hi = jax.lax.Precision.HIGHEST
        ref_mod = _reference_module(x, sigma, cond_emb, cond_scale, params,
                                    mm_dtype=jnp.float32, precision=hi)
        ref_fold = _reference_folded(x, sigma, cond_emb, alphas, params,
                                     mm_dtype=jnp.float32, precision=hi,
                                     bf16_eup=False)
        assert jnp.allclose(ref_fold, ref_mod, rtol=1e-3, atol=1e-3), \
            f"CFG fold mismatch @ cond_scale={cond_scale}"

    print("KERNEL_OK")
</pallas_src>

<mosaic_0001>
module attributes {stable_mosaic.version = 11 : i64} {
  func.func @_cfg_denoiser_kernel(%arg0: i32, %arg1: i32, %arg2: memref<2xf32, #tpu.memory_space<smem>>, %arg3: memref<1x4x256xf32, #tpu.memory_space<vmem>>, %arg4: memref<1x128x2xf32, #tpu.memory_space<vmem>>, %arg5: memref<128x4xbf16, #tpu.memory_space<vmem>>, %arg6: memref<4x128xbf16, #tpu.memory_space<vmem>>, %arg7: memref<4x1xf32, #tpu.memory_space<vmem>>, %arg8: memref<1x4x256xf32, #tpu.memory_space<vmem>>) attributes {dimension_semantics = [#tpu.dimension_semantics<parallel>, #tpu.dimension_semantics<parallel>], iteration_bounds = array<i64: 2, 1>, scalar_prefetch = 0 : i64, scratch_operands = 0 : i64, tpu.core_type = #tpu.core_type<tc>, window_params = [{transform_indices = @transform_0, window_bounds = array<i64: 2>}, {transform_indices = @transform_1, window_bounds = array<i64: 1, 4, 256>}, {transform_indices = @transform_2, window_bounds = array<i64: 1, 128, 2>}, {pipeline_mode = #tpu.pipeline_mode<synchronous>, transform_indices = @transform_3, window_bounds = array<i64: 128, 4>}, {pipeline_mode = #tpu.pipeline_mode<synchronous>, transform_indices = @transform_4, window_bounds = array<i64: 4, 128>}, {pipeline_mode = #tpu.pipeline_mode<synchronous>, transform_indices = @transform_5, window_bounds = array<i64: 4, 1>}, {transform_indices = @transform_6, window_bounds = array<i64: 1, 4, 256>}]} {
    %c0 = arith.constant 0 : index
    %c0_0 = arith.constant 0 : index
    %c0_1 = arith.constant 0 : index
    %0 = vector.load %arg3[%c0, %c0_0, %c0_1] : memref<1x4x256xf32, #tpu.memory_space<vmem>>, vector<1x4x256xf32>
    %1 = vector.shape_cast %0 : vector<1x4x256xf32> to vector<4x256xf32>
    %2 = arith.index_cast %arg0 : i32 to index
    %3 = memref.load %arg2[%2] : memref<2xf32, #tpu.memory_space<smem>>
    %4 = arith.mulf %3, %3 : f32
    %cst = arith.constant 1.000000e+00 : f32
    %5 = arith.addf %4, %cst : f32
    %6 = math.rsqrt %5 : f32
    %cst_2 = arith.constant 0.000000e+00 : f32
    %7 = arith.subf %cst_2, %3 : f32
    %8 = vector.broadcast %6 : f32 to vector<4x256xf32>
    %9 = arith.mulf %1, %8 : vector<4x256xf32>
    %10 = arith.truncf %9 : vector<4x256xf32> to vector<4x256xbf16>
    %c0_3 = arith.constant 0 : index
    %c0_4 = arith.constant 0 : index
    %11 = vector.load %arg5[%c0_3, %c0_4] : memref<128x4xbf16, #tpu.memory_space<vmem>>, vector<128x4xbf16>
    %cst_5 = arith.constant dense<0.000000e+00> : vector<128x256xf32>
    %12 = tpu.matmul %11, %10, %cst_5 {dimension_numbers = #tpu.dot_dimension_numbers<[1], [0], [0], [1], [0, 0, 1, 1], [], []>} : vector<128x4xbf16>, vector<4x256xbf16>, vector<128x256xf32> -> vector<128x256xf32>
    %c0_6 = arith.constant 0 : index
    %c0_7 = arith.constant 0 : index
    %c0_8 = arith.constant 0 : index
    %13 = vector.load %arg4[%c0_6, %c0_7, %c0_8] : memref<1x128x2xf32, #tpu.memory_space<vmem>>, vector<1x128x2xf32>
    %14 = vector.shape_cast %13 : vector<1x128x2xf32> to vector<128x2xf32>
    %15 = vector.extract_strided_slice %14 {offsets = [0, 0], sizes = [128, 1], strides = [1, 1]} : vector<128x2xf32> to vector<128x1xf32>
    %16 = vector.broadcast %15 : vector<128x1xf32> to vector<128x256xf32>
    %17 = arith.addf %12, %16 : vector<128x256xf32>
    %18 = math.tanh %17 : vector<128x256xf32>
    %cst_9 = arith.constant 7.500000e+00 : f32
    %19 = vector.broadcast %cst_9 : f32 to vector<128x256xf32>
    %20 = arith.mulf %19, %18 : vector<128x256xf32>
    %21 = vector.extract_strided_slice %14 {offsets = [0, 1], sizes = [128, 1], strides = [1, 1]} : vector<128x2xf32> to vector<128x1xf32>
    %22 = vector.broadcast %21 : vector<128x1xf32> to vector<128x256xf32>
    %23 = arith.addf %12, %22 : vector<128x256xf32>
    %24 = math.tanh %23 : vector<128x256xf32>
    %cst_10 = arith.constant -6.500000e+00 : f32
    %25 = vector.broadcast %cst_10 : f32 to vector<128x256xf32>
    %26 = arith.mulf %25, %24 : vector<128x256xf32>
    %27 = arith.addf %20, %26 : vector<128x256xf32>
    %c0_11 = arith.constant 0 : index
    %c0_12 = arith.constant 0 : index
    %28 = vector.load %arg6[%c0_11, %c0_12] : memref<4x128xbf16, #tpu.memory_space<vmem>>, vector<4x128xbf16>
    %29 = arith.truncf %27 : vector<128x256xf32> to vector<128x256xbf16>
    %cst_13 = arith.constant dense<0.000000e+00> : vector<4x256xf32>
    %30 = tpu.matmul %28, %29, %cst_13 {dimension_numbers = #tpu.dot_dimension_numbers<[1], [0], [0], [1], [0, 0, 1, 1], [], []>} : vector<4x128xbf16>, vector<128x256xbf16>, vector<4x256xf32> -> vector<4x256xf32>
    %c0_14 = arith.constant 0 : index
    %c0_15 = arith.constant 0 : index
    %31 = vector.load %arg7[%c0_14, %c0_15] : memref<4x1xf32, #tpu.memory_space<vmem>>, vector<4x1xf32>
    %32 = vector.broadcast %31 : vector<4x1xf32> to vector<4x256xf32>
    %33 = arith.addf %30, %32 : vector<4x256xf32>
    %34 = vector.broadcast %7 : f32 to vector<4x256xf32>
    %35 = arith.mulf %33, %34 : vector<4x256xf32>
    %36 = arith.addf %1, %35 : vector<4x256xf32>
    %c0_16 = arith.constant 0 : index
    %c0_17 = arith.constant 0 : index
    %c0_18 = arith.constant 0 : index
    %37 = vector.load %arg8[%c0_16, %c0_17, %c0_18] : memref<1x4x256xf32, #tpu.memory_space<vmem>>, vector<1x4x256xf32>
    %38 = vector.shape_cast %37 : vector<1x4x256xf32> to vector<4x256xf32>
    %39 = vector.shape_cast %36 : vector<4x256xf32> to vector<1x4x256xf32>
    tpu.vector_store %arg8[%c0_16, %c0_17, %c0_18], %39 {strides = array<i32>} : memref<1x4x256xf32, #tpu.memory_space<vmem>>, vector<1x4x256xf32>,
    return
  }
  func.func @transform_0(%arg0: i32, %arg1: i32) -> i32 {
    %c0_i32 = arith.constant 0 : i32
    %c0_i32_0 = arith.constant 0 : i32
    return %c0_i32 : i32
  }
  func.func @transform_1(%arg0: i32, %arg1: i32) -> (i32, i32, i32) {
    %c0_i32 = arith.constant 0 : i32
    %c0_i32_0 = arith.constant 0 : i32
    return %arg0, %c0_i32, %arg1 : i32, i32, i32
  }
  func.func @transform_2(%arg0: i32, %arg1: i32) -> (i32, i32, i32) {
    %c0_i32 = arith.constant 0 : i32
    %c0_i32_0 = arith.constant 0 : i32
    %c0_i32_1 = arith.constant 0 : i32
    return %arg0, %c0_i32, %c0_i32_0 : i32, i32, i32
  }
  func.func @transform_3(%arg0: i32, %arg1: i32) -> (i32, i32) {
    %c0_i32 = arith.constant 0 : i32
    %c0_i32_0 = arith.constant 0 : i32
    %c0_i32_1 = arith.constant 0 : i32
    return %c0_i32, %c0_i32_0 : i32, i32
  }
  func.func @transform_4(%arg0: i32, %arg1: i32) -> (i32, i32) {
    %c0_i32 = arith.constant 0 : i32
    %c0_i32_0 = arith.constant 0 : i32
    %c0_i32_1 = arith.constant 0 : i32
    return %c0_i32, %c0_i32_0 : i32, i32
  }
  func.func @transform_5(%arg0: i32, %arg1: i32) -> (i32, i32) {
    %c0_i32 = arith.constant 0 : i32
    %c0_i32_0 = arith.constant 0 : i32
    %c0_i32_1 = arith.constant 0 : i32
    return %c0_i32, %c0_i32_0 : i32, i32
  }
  func.func @transform_6(%arg0: i32, %arg1: i32) -> (i32, i32, i32) {
    %c0_i32 = arith.constant 0 : i32
    %c0_i32_0 = arith.constant 0 : i32
    return %arg0, %c0_i32, %arg1 : i32, i32, i32
  }
}

</mosaic_0001>

<bundles_post_ra>
// kernel: tpu_custom_call.1
= control target key start
LH: loop header
LB: loop body
LE: loop exit
PB: predicated region body
PF: predicated region fallthrough
CT: control target
= control target key end

     0   :  { %11 = vsyncpa [#allocation4], 0  ;;  %s1953_s0 = inlined_call_operand.vmem [shape: f32[2], index: 0, kind: input, shape index: {}]   ;;  %s1954_s1 = inlined_call_operand.vmem [shape: f32[2,4,256], index: 1, kind: input, shape index: {}]   ;;  %s1955_s2 = inlined_call_operand.vmem [shape: f32[2,128,2], index: 2, kind: input, shape index: {}]   ;;  %s1956_s3 = inlined_call_operand.vmem [shape: bf16[128,4], index: 3, kind: input, shape index: {}]   ;;  %s1957_s4 = inlined_call_operand.vmem [shape: bf16[4,128], index: 4, kind: input, shape index: {}]   ;;  %s1958_s5 = inlined_call_operand.vmem [shape: f32[4,1], index: 5, kind: input, shape index: {}]   ;;  %s1959_s6 = inlined_call_operand.hbm [shape: f32[2,4,256], index: 6, kind: output, shape index: {}]  }
   0x1   :  { %12 = vsyncpa [#allocation3], 0 }
   0x2   :  { %14 = vsyncpa [#allocation3 + $0x1], 0  ;;  %s1507_s21 = smov 0   ;;  %s1509_s22 = smov 0  }
   0x3   :  { %s1511_s23 = smov 0   ;;  %s1513_s24 = smov 0  }
   0x4   :  { %s1515_s25 = smov 0   ;;  %s1517_s26 = smov 0  }
   0x5 LB: > { %s1106_s27 = sadd.s32 4294967295, %s1466_s26   ;;  %s1107_s28 = sadd.s32 4294967294, %s1466_s26   ;;  %s1466_s26 = sphi %s1517_s26, %s20_s26   ;;  %s1462_s25 = sphi %s1515_s25, %s1971_s25   ;;  %s1458_s24 = sphi %s1513_s24, %s1970_s24   ;;  %s1454_s23 = sphi %s1511_s23, %s1969_s23   ;;  %s1450_s22 = sphi %s1509_s22, %s1968_s22   ;;  %s1446_s21 = sphi %s1507_s21, %s1967_s21  }
   0x6   : > { %s32_s29 = sadd.s32 1, %s1462_s25  ;;  %s179_s30 = sadd.s32 1, %s1454_s23 }
   0x7   : > { %p34_p0 = scmp.ge.s32.totalorder %s32_s29, 2  ;;  %p189_p1 = scmp.ne.s32.totalorder %s1454_s23, %s1450_s22 }
   0x8   : > { %p190_p2 = scmp.eq.s32.totalorder %s1106_s27, 1  ;;  %p195_p3 = scmp.ne.s32.totalorder %s1450_s22, %s1446_s21 }
   0x9   : > { %s1973_s29 = smov (%p34_p0, %s32_s29), 0  ;;  %p196_p5 = scmp.eq.s32.totalorder %s1107_s28, 1 }
   0xa   : > { %p1547_p4 = por %p190_p2, %p189_p1  ;;  %s174_s8 = ssub.s32 %s1462_s25, %s1973_s29 }
   0xb   : > { %p1108_p6 = scmp.ge.s32.totalorder %s1466_s26, 1  ;;  %p177_p7 = scmp.eq.s32.totalorder %s174_s8, 0 }
   0xc   : > { %p1554_p8 = por %p196_p5, %p195_p3  ;;  %p203_p9 = scmp.lt.s32.totalorder %s1466_s26, 3 }
   0xd   : > { %s1560_s10 = scalar_select %p177_p7, %s1454_s23, %s179_s30  }
   0xe   : > { %p1562_p10 = pnand %p1108_p6, %p203_p9  ;;  %p1566_p11 = scmp.eq.s32.totalorder %s1106_s27, 0 }
   0xf   : > { %s216_s15 = sshll.u32 %s1953_s0, 4  ;;  %s217_s15 = int_to_ptr.vmem [resolvable:$true] %s216_s15 }
  0x10   : > { %p1151_p12 = pneg %p1562_p10  ;;  %s1371_s16 = scalar_lea.vmem %s217_s15, 16 }
  0x11   : > { %p1372_p0 = scmp.ne.s32.totalorder %s217_s15, %s1371_s16  ;;  %p1379_p5 = scmp.lt.s32.totalorder %s217_s15, %s217_s15 }
  0x12   : > { %p1152_p13 = pnand %p1566_p11, %p1151_p12  ;;  %p1380_p6 = scmp.lt.s32.totalorder %s1371_s16, %s1371_s16 }
  0x14   : > { %p1373_p1 = pneg %p1152_p13  ;;  %p1381_p7 = por %p1380_p6, %p1379_p5 }
  0x16   : > { %p1374_p2 = pnand %p1373_p1, %p1372_p0 }
  0x18   : > { %p1375_p3 = pneg %p1374_p2 }
  0x1a   : > { %p1382_p9 = pnand %p1381_p7, %p1375_p3 }
  0x1c   : > { %1385 = shalt.err (!%p1382_p9)
}
  0x1d   : > { %s1468_s17 = smov [#allocation2]   ;;  %259 = sbr.rel (%p1562_p10) target bundleno = 649 (0x289), region = 44 }
  0x1e   : > { %1154 = dma.vmem_to_smem (!%p1152_p13), %s217_s15, 16, %s1468_s17, [#allocation4]  }
  0x22   : > { %1437 = dma.done.wait (%p1566_p11), [#allocation4], 16  }
  0x23   : > { %1439 = vsyncadd (%p1566_p11), [#allocation4], 4294967280 }
  0x24   : > { %265 = sfence }
  0x25   : > { %s1584_s18 = sld [smem:[#allocation2 + %s1458_s24]]  ;;  %p300_p12 = scmp.lt.s32.totalorder %s1458_s24, 1  ;;  %v1469_v0 = vmov 1   ;;  %v1470_v1 = vmov 0   ;;  %vm412_vm0 = vcmask 1041408   ;;  %v1233_v26 = vld [vmem:[%s1956_s3] sm:$0xff]  }
  0x26   : > { %1213 = vset.pattern.permute.xlu1 %v1469_v0  ;;  %451 = vmatprep.mubr.bf16.mxu0 %v1470_v1  ;;  %vm387_vm1 = vcmask 31744   ;;  %v1234_v28 = vld [vmem:[%s1956_s3 + $0x8] sm:$0xff]   ;;  %v1235_v29 = vld [vmem:[%s1956_s3 + $0x10] sm:$0xff]   ;;  %v1236_v30 = vld [vmem:[%s1956_s3 + $0x18] sm:$0xff]   ;;  %s1142_s14 = sshll.u32 %s1458_s24, 7  ;;  %s1471_s28 = smov [#allocation5]  }
  0x27   : > { %s1590_s19 = scalar_select %p300_p12, %s1458_s24, 1  ;;  %1215 = vset.pattern.permute.xlu0 %v1469_v0  ;;  %971 = vmatprep.mubr.bf16.mxu1 %v1470_v1  ;;  %v1237_v31 = vld [vmem:[%s1956_s3 + $0x20] sm:$0xff]   ;;  %v1238_v32 = vld [vmem:[%s1956_s3 + $0x28] sm:$0xff]   ;;  %v1239_v33 = vld [vmem:[%s1956_s3 + $0x30] sm:$0xff]  }
  0x28   : > { %v1240_v34 = vld [vmem:[%s1956_s3 + $0x38] sm:$0xff]   ;;  %v933_v63 = vld [vmem:[%s1958_s5] sm:$0xf] }
  0x29   : > { %s1141_s20 = sshll.u32 %s1590_s19, 7  ;;  %s1140_s12 = sshll.u32 %s1590_s19, 3 }
  0x2a   : > { %s1598_s30 = scalar_lea.vmem %s1955_s2, %s1141_s20  ;;  %s307_s15 = scalar_lea.vmem %s1954_s1, %s1140_s12 }
  0x2b   : > { %s318_s8 = smul.f32 %s1584_s18, %s1584_s18  ;;  %v546_v2 = vld [vmem:[%s1598_s30 + $0x70] sm:$0xff]  ;;  %v547_v3 = vld [vmem:[%s1598_s30 + $0x78] sm:$0xff]  ;;  %v544_v4 = vld [vmem:[%s1598_s30 + $0x60] sm:$0xff]  ;;  %s323_s12 = ssub.f32 0.0, %s1584_s18 }
  0x2c   : > { %781 = vperm.xlu1 %1213, %v546_v2   ;;  %773 = vperm.xlu0 %1215, %v544_v4   ;;  %v540_v6 = vld [vmem:[%s1598_s30 + $0x40] sm:$0xff]  ;;  %v545_v7 = vld [vmem:[%s1598_s30 + $0x68] sm:$0xff]  ;;  %v542_v9 = vld [vmem:[%s1598_s30 + $0x50] sm:$0xff]  ;;  %s1004_s18 = scalar_lea.hbm %s1959_s6, %s1142_s14 }
  0x2d   : > { %s319_s11 = sadd.f32 1.0, %s318_s8  ;;  %v536_v8 = vld [vmem:[%s1598_s30 + $0x20] sm:$0xff]  ;;  %v543_v11 = vld [vmem:[%s1598_s30 + $0x58] sm:$0xff]  ;;  %v541_v12 = vld [vmem:[%s1598_s30 + $0x48] sm:$0xff] }
  0x2e   : > { %v539_v13 = vld [vmem:[%s1598_s30 + $0x38] sm:$0xff]  ;;  %v538_v14 = vld [vmem:[%s1598_s30 + $0x30] sm:$0xff]  ;;  %v532_v16 = vld [vmem:[%s1598_s30] sm:$0xff] }
  0x2f   : > { %v320_v5 = vstv %s319_s11  ;;  %v535_v15 = vld [vmem:[%s1598_s30 + $0x18] sm:$0xff]  ;;  %v537_v17 = vld [vmem:[%s1598_s30 + $0x28] sm:$0xff]  ;;  %v534_v18 = vld [vmem:[%s1598_s30 + $0x10] sm:$0xff]  ;;  %s296_s11 = sand.u32 1, %s1450_s22  }
  0x30   : > { %1241 = vrsqrt.f32 %v320_v5  ;;  %785 = vperm.xlu1 %1213, %v547_v3   ;;  %757 = vperm.xlu0 %1215, %v540_v6   ;;  %v1634_v19 = vld [vmem:[%s307_s15] sm:$0xff]  ;;  %v533_v27 = vld [vmem:[%s1598_s30 + $0x8] sm:$0xff]  ;;  %s1113_s13 = sshll.u32 %s296_s11, 3  ;;  %s990_s20 = scalar_lea.sflag [#allocation3], %s296_s11 }
  0x31   : > { %s298_s15 = scalar_lea.vmem [#allocation5], %s1113_s13  ;;  %s1390_s30 = sshll.u32 %s1471_s28, 4  ;;  %s1391_s30 = int_to_ptr.vmem [resolvable:$false] %s1390_s30 }
  0x32   : > { %s1392_s24 = scalar_lea.vmem %s1391_s30, 256 }
  0x34   : > { %1214 = vset.pattern.permute.xlu1 %v1470_v1  ;;  %741 = vperm.xlu0 %1215, %v536_v8  }
  0x35   : > { %615 = vperm.xlu1 %1214, %v545_v7  }
  0x38   : > { %1224 = vset.pattern.permute.xlu0 %v1470_v1 }
  0x39   : > { %1216 = vset.pattern.permute.xlu1 %v1469_v0  ;;  %620 = vperm.xlu0 %1224, %v546_v2  }
  0x3a   : > { %777 = vperm.xlu1 %1216, %v545_v7  }
  0x3d   : > { %v1242_v10 = vpop.eup %1241  ;;  %625 = vperm.xlu0 %1224, %v547_v3  }
  0x3e   : > { %1143 = vpush %v1242_v10  ;;  %1217 = vset.pattern.permute.xlu1 %v1470_v1 }
  0x3f   : > { %600 = vperm.xlu1 %1217, %v542_v9  }
  0x41   : > { %610 = vperm.xlu0 %1224, %v544_v4  }
  0x43   : > { %1218 = vset.pattern.permute.xlu1 %v1469_v0 }
  0x44   : > { %765 = vperm.xlu1 %1218, %v542_v9  }
  0x45   : > { %605 = vperm.xlu0 %1224, %v543_v11  }
  0x48   : > { %769 = vperm.xlu1 %1218, %v543_v11  }
  0x49   : > { %590 = vperm.xlu0 %1224, %v540_v6  }
  0x4c   : > { %1219 = vset.pattern.permute.xlu1 %v1470_v1 }
  0x4d   : > { %595 = vperm.xlu1 %1219, %v541_v12   ;;  %585 = vperm.xlu0 %1224, %v539_v13  }
  0x51   : > { %1220 = vset.pattern.permute.xlu1 %v1469_v0  ;;  %570 = vperm.xlu0 %1224, %v536_v8  }
  0x52   : > { %761 = vperm.xlu1 %1220, %v541_v12  }
  0x55   : > { %565 = vperm.xlu0 %1224, %v535_v15  }
  0x56   : > { %1221 = vset.pattern.permute.xlu1 %v1470_v1 }
  0x57   : > { %580 = vperm.xlu1 %1221, %v538_v14  }
  0x59   : > { %550 = vperm.xlu0 %1224, %v532_v16  }
  0x5b   : > { %1222 = vset.pattern.permute.xlu1 %v1469_v0 }
  0x5c   : > { %749 = vperm.xlu1 %1222, %v538_v14  }
  0x5d   : > { %1229 = vset.pattern.permute.xlu0 %v1469_v0 }
  0x5e   : > { %725 = vperm.xlu0 %1229, %v532_v16  }
  0x60   : > { %753 = vperm.xlu1 %1222, %v539_v13  }
  0x62   : > { %1232 = vset.pattern.permute.xlu0 %v1470_v1 }
  0x64   : > { %1223 = vset.pattern.permute.xlu1 %v1470_v1 }
  0x65   : > { %575 = vperm.xlu1 %1223, %v537_v17  }
  0x69   : > { %1225 = vset.pattern.permute.xlu1 %v1469_v0 }
  0x6a   : > { %745 = vperm.xlu1 %1225, %v537_v17  }
  0x6e   : > { %1226 = vset.pattern.permute.xlu1 %v1470_v1 }
  0x6f   : > { %s1144_s16 = spop %1143  ;;  %560 = vperm.xlu1 %1226, %v534_v18  }
  0x70   : > { %v324_v20 = vstv %s1144_s16  ;;  %s1006_s16 = sshll.u32 %s298_s15, 4  ;;  %s1007_s16 = int_to_ptr.vmem [resolvable:$true] %s1006_s16 }
  0x71   : > { %v325_v21 = vmul.f32 %v324_v20, %v1634_v19  ;;  %s1386_s27 = scalar_lea.vmem %s1007_s16, 128  ;;  %p1393_p0 = scmp.lt.s32.totalorder %s1007_s16, %s1391_s30 }
  0x72   : > { %p1387_p10 = scmp.ne.s32.totalorder %s1007_s16, %s1386_s27  ;;  %p1394_p1 = scmp.lt.s32.totalorder %s1392_s24, %s1386_s27 }
  0x73   : > { %v327_v22 = vcombine.high %v325_v21, %v325_v21  ;;  %v329_v23 = vpack.c.bf16 %v325_v21, %v325_v21  ;;  %1227 = vset.pattern.permute.xlu1 %v1469_v0 }
  0x74   : > { %733 = vperm.xlu1 %1227, %v534_v18   ;;  %p1388_p11 = pnand %p1387_p10, %p1547_p4  ;;  %p1395_p2 = por %p1394_p1, %p1393_p0 }
  0x75   : > { %v330_v24 = vpack.c.bf16 %v327_v22, %v327_v22  ;;  %v414_v25 = vsel %vm412_vm0, %v329_v23, 0 }
  0x76   : > { %p1389_p13 = pneg %p1388_p11 }
  0x77   : > { %1126 = vmatprep.subr.msk.bf16.mxu0 %vm412_vm0, %v330_v24 }
  0x78   : > { %434 = vmatpush1.bf16.msra.mxu0 %v414_v25  ;;  %737 = vperm.xlu1 %1227, %v535_v15   ;;  %p1396_p3 = pnand %p1395_p2, %p1389_p13 }
  0x7b   : > { %1127 = vmatmul.mubr.msk.bf16.vlgmr.msra.gmra.mxu0 %vm387_vm1, %v1233_v26 }
  0x7c   : > { %461 = vmatprep.mubr.bf16.mxu0 %v1470_v1  ;;  %1228 = vset.pattern.permute.xlu1 %v1470_v1 }
  0x7d   : > { %555 = vperm.xlu1 %1228, %v533_v27  }
  0x81   : > { %1230 = vset.pattern.permute.xlu1 %v1469_v0 }
  0x82   : > { %729 = vperm.xlu1 %1230, %v533_v27  }
  0x83   : > { %1128 = vmatmul.mubr.msk.bf16.gmra.mxu0 %vm387_vm1, %v1234_v28 }
  0x84   : > { %471 = vmatprep.mubr.bf16.mxu0 %v1470_v1 }
  0x86   : > { %1231 = vset.pattern.permute.xlu1 %v1470_v1 }
  0x87   : > { %936 = vperm.xlu1 %1231, %v933_v63  }
  0x8b   : > { %1129 = vmatmul.mubr.msk.bf16.gmra.mxu0 %vm387_vm1, %v1235_v29 }
  0x8c   : > { %481 = vmatprep.mubr.bf16.mxu0 %v1470_v1 }
  0x93   : > { %1130 = vmatmul.mubr.msk.bf16.gmra.mxu0 %vm387_vm1, %v1236_v30 }
  0x94   : > { %491 = vmatprep.mubr.bf16.mxu0 %v1470_v1 }
  0x9b   : > { %1131 = vmatmul.mubr.msk.bf16.gmra.mxu0 %vm387_vm1, %v1237_v31 }
  0x9c   : > { %501 = vmatprep.mubr.bf16.mxu0 %v1470_v1 }
  0xa3   : > { %1132 = vmatmul.mubr.msk.bf16.gmra.mxu0 %vm387_vm1, %v1238_v32 }
  0xa4   : > { %511 = vmatprep.mubr.bf16.mxu0 %v1470_v1 }
  0xa7   : > { %v1682_v35 = vpop.permute.xlu1 %781  ;;  %v1694_v41 = vpop.permute.xlu0 %773 }
  0xab   : > { %1133 = vmatmul.mubr.msk.bf16.gmra.mxu0 %vm387_vm1, %v1239_v33  ;;  %v1684_v36 = vpop.permute.xlu1 %785  ;;  %v1698_v43 = vpop.permute.xlu0 %757 }
  0xac   : > { %521 = vmatprep.mubr.bf16.mxu0 %v1470_v1 }
  0xaf   : > { %v1702_v45 = vpop.permute.xlu0 %741 }
  0xb0   : > { %v1686_v37 = vpop.permute.xlu1 %615 }
  0xb3   : > { %1134 = vmatmul.mubr.msk.bf16.gmra.mxu0 %vm387_vm1, %v1240_v34 }
  0xb4   : > { %v1706_v47 = vpop.permute.xlu0 %620 }
  0xb5   : > { %v1688_v38 = vpop.permute.xlu1 %777 }
  0xb8   : > { %v1710_v49 = vpop.permute.xlu0 %625 }
  0xba   : > { %v1690_v39 = vpop.permute.xlu1 %600 }
  0xbc   : > { %v1714_v51 = vpop.permute.xlu0 %610 }
  0xbf   : > { %v1692_v40 = vpop.permute.xlu1 %765 }
  0xc0   : > { %v1718_v53 = vpop.permute.xlu0 %605 }
  0xc3   : > { %v1696_v42 = vpop.permute.xlu1 %769 }
  0xc4   : > { %v1722_v55 = vpop.permute.xlu0 %590 }
  0xc8   : > { %v1700_v44 = vpop.permute.xlu1 %595  ;;  %v1726_v57 = vpop.permute.xlu0 %585 }
  0xcc   : > { %v1728_v59 = vpop.permute.xlu0 %570 }
  0xcd   : > { %v1704_v46 = vpop.permute.xlu1 %761 }
  0xd0   : > { %v566_v61 = vpop.permute.xlu0 %565 }
  0xd2   : > { %v1708_v48 = vpop.permute.xlu1 %580 }
  0xd4   : > { %v551_v0 = vpop.permute.xlu0 %550 }
  0xd7   : > { %v1712_v50 = vpop.permute.xlu1 %749 }
  0xd9   : > { %v726_v2 = vpop.permute.xlu0 %725 }
  0xdb   : > { %v1716_v52 = vpop.permute.xlu1 %753 }
  0xe0   : > { %v1720_v54 = vpop.permute.xlu1 %575 }
  0xe5   : > { %v1724_v56 = vpop.permute.xlu1 %745 }
  0xea   : > { %v561_v58 = vpop.permute.xlu1 %560 }
  0xef   : > { %v734_v60 = vpop.permute.xlu1 %733 }
  0xf3   : > { %v738_v62 = vpop.permute.xlu1 %737 }
  0xf8   : > { %v556_v1 = vpop.permute.xlu1 %555 }
  0xfd   : > { %v730_v7 = vpop.permute.xlu1 %729 }
 0x13b   : > { %v453_v3 = vpop.f32.mrf.mxu0 }
 0x13c   : > { %v628_v4 = vadd.f32 %v551_v0, %v453_v3  ;;  %v788_v5 = vadd.f32 %v726_v2, %v453_v3 }
 0x13d   : > { %v455_v6 = vpop.f32.mrf.mxu0 }
 0x13e   : > { %1243 = vtanh.f32 %v628_v4  ;;  %v629_v8 = vadd.f32 %v551_v0, %v455_v6  ;;  %v789_v9 = vadd.f32 %v726_v2, %v455_v6 }
 0x13f   : > { %1245 = vtanh.f32 %v788_v5  ;;  %v457_v10 = vpop.f32.mrf.mxu0 }
 0x140   : > { %1247 = vtanh.f32 %v629_v8  ;;  %v630_v11 = vadd.f32 %v556_v1, %v457_v10  ;;  %v790_v12 = vadd.f32 %v730_v7, %v457_v10 }
 0x141   : > { %1249 = vtanh.f32 %v789_v9  ;;  %v459_v13 = vpop.f32.mrf.mxu0 }
 0x142   : > { %1251 = vtanh.f32 %v630_v11  ;;  %v631_v14 = vadd.f32 %v556_v1, %v459_v13  ;;  %v791_v15 = vadd.f32 %v730_v7, %v459_v13 }
 0x143   : > { %1253 = vtanh.f32 %v790_v12  ;;  %v463_v16 = vpop.f32.mrf.mxu0 }
 0x144   : > { %1255 = vtanh.f32 %v631_v14  ;;  %v632_v17 = vadd.f32 %v561_v58, %v463_v16  ;;  %v792_v18 = vadd.f32 %v734_v60, %v463_v16 }
 0x145   : > { %1257 = vtanh.f32 %v791_v15  ;;  %v465_v20 = vpop.f32.mrf.mxu0 }
 0x146   : > { %1259 = vtanh.f32 %v632_v17  ;;  %v633_v21 = vadd.f32 %v561_v58, %v465_v20  ;;  %v793_v22 = vadd.f32 %v734_v60, %v465_v20 }
 0x147   : > { %1261 = vtanh.f32 %v792_v18  ;;  %v467_v23 = vpop.f32.mrf.mxu0 }
 0x148   : > { %1263 = vtanh.f32 %v633_v21  ;;  %v634_v24 = vadd.f32 %v566_v61, %v467_v23  ;;  %v794_v25 = vadd.f32 %v738_v62, %v467_v23 }
 0x149   : > { %1265 = vtanh.f32 %v793_v22  ;;  %v469_v26 = vpop.f32.mrf.mxu0 }
 0x14a   : > { %1267 = vtanh.f32 %v634_v24  ;;  %v635_v27 = vadd.f32 %v566_v61, %v469_v26  ;;  %v795_v28 = vadd.f32 %v738_v62, %v469_v26 }
 0x14b   : > { %v1244_v29 = vpop.eup %1243  ;;  %1269 = vtanh.f32 %v794_v25  ;;  %v1733_v30 = vpop.f32.mrf.mxu0 }
 0x14c   : > { %v1246_v31 = vpop.eup %1245  ;;  %1271 = vtanh.f32 %v635_v27  ;;  %v692_v60 = vmul.f32 7.5, %v1244_v29  ;;  %v636_v21 = vadd.f32 %v1728_v59, %v1733_v30 }
 0x14d   : > { %v1248_v32 = vpop.eup %1247  ;;  %1273 = vtanh.f32 %v795_v28  ;;  %v475_v33 = vpop.f32.mrf.mxu0  ;;  %v852_v63 = vmul.f32 -6.5, %v1246_v31 }
 0x14e   : > { %v1250_v34 = vpop.eup %1249  ;;  %v693_v61 = vmul.f32 7.5, %v1248_v32  ;;  %v637_v29 = vadd.f32 %v1728_v59, %v475_v33  ;;  %1275 = vtanh.f32 %v636_v21 }
 0x14f   : > { %v1252_v58 = vpop.eup %1251  ;;  %v1735_v0 = vpop.f32.mrf.mxu0  ;;  %v853_v62 = vmul.f32 -6.5, %v1250_v34  ;;  %v1739_v11 = vadd.f32 %v852_v63, %v692_v60 }
 0x150   : > { %v1254_v1 = vpop.eup %1253  ;;  %v694_v2 = vmul.f32 7.5, %v1252_v58  ;;  %1277 = vtanh.f32 %v637_v29 }
 0x151   : > { %v1256_v3 = vpop.eup %1255  ;;  %v854_v4 = vmul.f32 -6.5, %v1254_v1  ;;  %v479_v5 = vpop.f32.mrf.mxu0  ;;  %v1743_v16 = vadd.f32 %v853_v62, %v693_v61  ;;  %v638_v61 = vadd.f32 %v1720_v54, %v1735_v0 }
 0x152   : > { %v1258_v6 = vpop.eup %1257  ;;  %v695_v7 = vmul.f32 7.5, %v1256_v3  ;;  %v639_v59 = vadd.f32 %v1720_v54, %v479_v5 }
 0x153   : > { %v1260_v8 = vpop.eup %1259  ;;  %v855_v9 = vmul.f32 -6.5, %v1258_v6  ;;  %v1737_v10 = vpop.f32.mrf.mxu0  ;;  %v1741_v12 = vadd.f32 %v854_v4, %v694_v2  ;;  %v797_v2 = vadd.f32 %v1702_v45, %v475_v33 }
 0x154   : > { %v1262_v13 = vpop.eup %1261  ;;  %v696_v23 = vmul.f32 7.5, %v1260_v8 }
 0x155   : > { %v1264_v14 = vpop.eup %1263  ;;  %v485_v15 = vpop.f32.mrf.mxu0  ;;  %v1745_v17 = vadd.f32 %v855_v9, %v695_v7  ;;  %v856_v24 = vmul.f32 -6.5, %v1262_v13  ;;  %v799_v7 = vadd.f32 %v1724_v56, %v479_v5  ;;  %1279 = vtanh.f32 %v797_v2 }
 0x156   : > { %v1266_v20 = vpop.eup %1265  ;;  %v697_v32 = vmul.f32 7.5, %v1264_v14  ;;  %v640_v14 = vadd.f32 %v1708_v48, %v1737_v10  ;;  %1281 = vtanh.f32 %v638_v61  ;;  %v801_v5 = vadd.f32 %v1712_v50, %v485_v15 }
 0x157   : > { %v1268_v22 = vpop.eup %1267  ;;  %v1751_v25 = vpop.f32.mrf.mxu0  ;;  %v857_v34 = vmul.f32 -6.5, %v1266_v20  ;;  %v1761_v4 = vadd.f32 %v856_v24, %v696_v23  ;;  %v641_v20 = vadd.f32 %v1708_v48, %v485_v15  ;;  %1283 = vtanh.f32 %v639_v59 }
 0x158   : > { %v1270_v27 = vpop.eup %1269  ;;  %v698_v28 = vmul.f32 7.5, %v1268_v22  ;;  %1285 = vtanh.f32 %v799_v7 }
 0x159   : > { %v1272_v31 = vpop.eup %1271  ;;  %v858_v58 = vmul.f32 -6.5, %v1270_v27  ;;  %v489_v60 = vpop.f32.mrf.mxu0  ;;  %v1767_v9 = vadd.f32 %v857_v34, %v697_v32  ;;  %1287 = vtanh.f32 %v640_v14 }
 0x15a   : > { %v1274_v63 = vpop.eup %1273  ;;  %v699_v1 = vmul.f32 7.5, %v1272_v31  ;;  %v643_v22 = vadd.f32 %v1726_v57, %v489_v60  ;;  %v803_v24 = vadd.f32 %v1716_v52, %v489_v60  ;;  %1289 = vtanh.f32 %v641_v20 }
 0x15b   : > { %v859_v3 = vmul.f32 -6.5, %v1274_v63  ;;  %v1759_v62 = vpop.f32.mrf.mxu0  ;;  %v1763_v6 = vadd.f32 %v858_v58, %v698_v28  ;;  %1291 = vtanh.f32 %v801_v5  ;;  %v1789_v32 = vpop.eup %1275 }
 0x15c   : > { %1293 = vtanh.f32 %v643_v22 }
 0x15d   : > { %v495_v8 = vpop.f32.mrf.mxu0  ;;  %v1769_v13 = vadd.f32 %v859_v3, %v699_v1  ;;  %1295 = vtanh.f32 %v803_v24  ;;  %v1795_v63 = vpop.eup %1277 }
 0x15e   : > { %v645_v27 = vadd.f32 %v1722_v55, %v495_v8  ;;  %v805_v48 = vadd.f32 %v1698_v43, %v495_v8 }
 0x15f   : > { %v1776_v21 = vpop.f32.mrf.mxu0  ;;  %v920_v54 = vpack.c.bf16 %v1769_v13, %v1767_v9  ;;  %v937_v9 = vpop.permute.xlu1 %936 }
 0x160   : > { %1297 = vtanh.f32 %v645_v27 }
 0x161   : > { %v499_v23 = vpop.f32.mrf.mxu0  ;;  %1299 = vtanh.f32 %v805_v48 }
 0x162   : > { %v647_v29 = vadd.f32 %v1700_v44, %v499_v23  ;;  %v807_v15 = vadd.f32 %v1704_v46, %v499_v23  ;;  %v1799_v61 = vpop.eup %1279 }
 0x163   : > { %v1784_v28 = vpop.f32.mrf.mxu0  ;;  %v1801_v7 = vpop.eup %1281 }
 0x164   : > { %1301 = vtanh.f32 %v647_v29  ;;  %v1804_v14 = vpop.eup %1283 }
 0x165   : > { %v505_v31 = vpop.f32.mrf.mxu0  ;;  %1303 = vtanh.f32 %v807_v15  ;;  %v1806_v5 = vpop.eup %1285 }
 0x166   : > { %v649_v34 = vadd.f32 %v1690_v39, %v505_v31  ;;  %v809_v60 = vadd.f32 %v1692_v40, %v505_v31  ;;  %v1810_v24 = vpop.eup %1287 }
 0x167   : > { %v1792_v58 = vpop.f32.mrf.mxu0  ;;  %v1812_v48 = vpop.eup %1289 }
 0x168   : > { %1305 = vtanh.f32 %v649_v34  ;;  %v1816_v15 = vpop.eup %1291 }
 0x169   : > { %v509_v1 = vpop.f32.mrf.mxu0  ;;  %1307 = vtanh.f32 %v809_v60  ;;  %v1818_v60 = vpop.eup %1293 }
 0x16a   : > { %v651_v2 = vadd.f32 %v1718_v53, %v509_v1  ;;  %v811_v3 = vadd.f32 %v1696_v42, %v509_v1 }
 0x16b   : > { %v513_v59 = vpop.f32.mrf.mxu0 }
 0x16c   : > { %v652_v8 = vadd.f32 %v1714_v51, %v513_v59  ;;  %1309 = vtanh.f32 %v651_v2  ;;  %v1822_v2 = vpop.eup %1295 }
 0x16d   : > { %v515_v20 = vpop.f32.mrf.mxu0  ;;  %1311 = vtanh.f32 %v811_v3 }
 0x16e   : > { %v653_v22 = vadd.f32 %v1714_v51, %v515_v20  ;;  %v813_v23 = vadd.f32 %v1694_v41, %v515_v20  ;;  %1313 = vtanh.f32 %v652_v8  ;;  %v1824_v8 = vpop.eup %1297 }
 0x16f   : > { %v517_v27 = vpop.f32.mrf.mxu0 }
 0x170   : > { %1315 = vtanh.f32 %v653_v22  ;;  %v654_v29 = vadd.f32 %v1686_v37, %v517_v27  ;;  %v814_v31 = vadd.f32 %v1688_v38, %v517_v27 }
 0x171   : > { %1317 = vtanh.f32 %v813_v23  ;;  %v519_v34 = vpop.f32.mrf.mxu0  ;;  %v1828_v23 = vpop.eup %1299 }
 0x172   : > { %1319 = vtanh.f32 %v654_v29  ;;  %v655_v51 = vadd.f32 %v1686_v37, %v519_v34  ;;  %v815_v1 = vadd.f32 %v1688_v38, %v519_v34  ;;  %v1830_v29 = vpop.eup %1301 }
 0x173   : > { %1321 = vtanh.f32 %v814_v31  ;;  %v523_v3 = vpop.f32.mrf.mxu0  ;;  %v1834_v31 = vpop.eup %1303 }
 0x174   : > { %1323 = vtanh.f32 %v655_v51  ;;  %v656_v20 = vadd.f32 %v1706_v47, %v523_v3  ;;  %v816_v22 = vadd.f32 %v1682_v35, %v523_v3 }
 0x175   : > { %1325 = vtanh.f32 %v815_v1  ;;  %v525_v27 = vpop.f32.mrf.mxu0  ;;  %v1836_v51 = vpop.eup %1305 }
 0x176   : > { %1327 = vtanh.f32 %v656_v20  ;;  %v657_v37 = vadd.f32 %v1706_v47, %v525_v27  ;;  %v817_v38 = vadd.f32 %v1682_v35, %v525_v27  ;;  %v1840_v1 = vpop.eup %1307  ;;  %v812_v47 = vadd.f32 %v1694_v41, %v513_v59 }
 0x177   : > { %1329 = vtanh.f32 %v816_v22  ;;  %v527_v34 = vpop.f32.mrf.mxu0  ;;  %v648_v41 = vadd.f32 %v1690_v39, %v1784_v28  ;;  %v644_v39 = vadd.f32 %v1722_v55, %v1759_v62  ;;  %v800_v55 = vadd.f32 %v1712_v50, %v1737_v10 }
 0x178   : > { %1331 = vtanh.f32 %v657_v37  ;;  %v658_v3 = vadd.f32 %v1710_v49, %v527_v34  ;;  %v818_v18 = vadd.f32 %v1684_v36, %v527_v34  ;;  %v650_v37 = vadd.f32 %v1718_v53, %v1792_v58 }
 0x179   : > { %1333 = vtanh.f32 %v817_v38  ;;  %v529_v26 = vpop.f32.mrf.mxu0  ;;  %v1842_v20 = vpop.eup %1309  ;;  %v810_v38 = vadd.f32 %v1696_v42, %v1792_v58  ;;  %v646_v53 = vadd.f32 %v1700_v44, %v1776_v21  ;;  %v806_v42 = vadd.f32 %v1704_v46, %v1776_v21 }
 0x17a   : > { %1335 = vtanh.f32 %v658_v3  ;;  %v659_v35 = vadd.f32 %v1710_v49, %v529_v26  ;;  %v819_v22 = vadd.f32 %v1684_v36, %v529_v26  ;;  %v1847_v27 = vpop.eup %1311  ;;  %v808_v36 = vadd.f32 %v1692_v40, %v1784_v28 }
 0x17b   : > { %1337 = vtanh.f32 %v818_v18  ;;  %v1851_v34 = vpop.eup %1313  ;;  %v804_v40 = vadd.f32 %v1698_v43, %v1759_v62  ;;  %v642_v44 = vadd.f32 %v1726_v57, %v1751_v25  ;;  %v802_v46 = vadd.f32 %v1716_v52, %v1751_v25 }
 0x17c   : > { %1339 = vtanh.f32 %v659_v35  ;;  %v798_v43 = vadd.f32 %v1724_v56, %v1735_v0  ;;  %v796_v57 = vadd.f32 %v1702_v45, %v1733_v30  ;;  %v715_v45 = vmul.f32 7.5, %v1842_v20 }
 0x17d   : > { %v1316_v33 = vpop.eup %1315  ;;  %1341 = vtanh.f32 %v819_v22  ;;  %v873_v20 = vmul.f32 -6.5, %v1840_v1 }
 0x17e   : > { %v1318_v49 = vpop.eup %1317  ;;  %1343 = vtanh.f32 %v812_v47  ;;  %v717_v56 = vmul.f32 7.5, %v1316_v33 }
 0x17f   : > { %v1320_v26 = vpop.eup %1319  ;;  %1345 = vtanh.f32 %v650_v37  ;;  %v877_v0 = vmul.f32 -6.5, %v1318_v49 }
 0x180   : > { %v1322_v18 = vpop.eup %1321  ;;  %1347 = vtanh.f32 %v810_v38  ;;  %v718_v30 = vmul.f32 7.5, %v1320_v26 }
 0x181   : > { %v1324_v58 = vpop.eup %1323  ;;  %1349 = vtanh.f32 %v648_v41 }
 0x182   : > { %v1326_v59 = vpop.eup %1325  ;;  %1351 = vtanh.f32 %v808_v36  ;;  %v719_v22 = vmul.f32 7.5, %v1324_v58  ;;  %v878_v58 = vmul.f32 -6.5, %v1322_v18  ;;  %v909_v18 = vadd.f32 %v877_v0, %v717_v56 }
 0x183   : > { %v1328_v28 = vpop.eup %1327  ;;  %1353 = vtanh.f32 %v646_v53  ;;  %v879_v37 = vmul.f32 -6.5, %v1326_v59 }
 0x184   : > { %v1330_v3 = vpop.eup %1329  ;;  %1355 = vtanh.f32 %v806_v42  ;;  %v720_v10 = vmul.f32 7.5, %v1328_v28  ;;  %v716_v28 = vmul.f32 7.5, %v1851_v34 }
 0x185   : > { %v1332_v21 = vpop.eup %1331  ;;  %1357 = vtanh.f32 %v644_v39  ;;  %v880_v42 = vmul.f32 -6.5, %v1330_v3 }
 0x186   : > { %v1334_v47 = vpop.eup %1333  ;;  %1359 = vtanh.f32 %v804_v40  ;;  %v721_v38 = vmul.f32 7.5, %v1332_v21  ;;  %v875_v21 = vmul.f32 -6.5, %v1847_v27 }
 0x187   : > { %v1336_v35 = vpop.eup %1335  ;;  %1361 = vtanh.f32 %v642_v44  ;;  %v881_v41 = vmul.f32 -6.5, %v1334_v47  ;;  %v912_v33 = vadd.f32 %v880_v42, %v720_v10  ;;  %v709_v42 = vmul.f32 7.5, %v1824_v8 }
 0x188   : > { %v1338_v62 = vpop.eup %1337  ;;  %1363 = vtanh.f32 %v802_v46  ;;  %v722_v52 = vmul.f32 7.5, %v1336_v35 }
 0x189   : > { %v1340_v25 = vpop.eup %1339  ;;  %v882_v36 = vmul.f32 -6.5, %v1338_v62  ;;  %1365 = vtanh.f32 %v800_v55  ;;  %v913_v47 = vadd.f32 %v881_v41, %v721_v38  ;;  %v911_v55 = vadd.f32 %v879_v37, %v719_v22 }
 0x18a   : > { %v1342_v53 = vpop.eup %1341  ;;  %v723_v50 = vmul.f32 7.5, %v1340_v25  ;;  %1367 = vtanh.f32 %v798_v43  ;;  %v713_v43 = vmul.f32 7.5, %v1836_v51  ;;  %v910_v38 = vadd.f32 %v878_v58, %v718_v30 }
 0x18b   : > { %v1344_v39 = vpop.eup %1343  ;;  %v883_v40 = vmul.f32 -6.5, %v1342_v53  ;;  %v914_v46 = vadd.f32 %v882_v36, %v722_v52  ;;  %1369 = vtanh.f32 %v796_v57  ;;  %v711_v22 = vmul.f32 7.5, %v1830_v29 }
 0x18c   : > { %v1346_v44 = vpop.eup %1345  ;;  %v876_v3 = vmul.f32 -6.5, %v1344_v39  ;;  %v871_v57 = vmul.f32 -6.5, %v1834_v31  ;;  %v930_v34 = vpack.c.bf16 %v911_v55, %v909_v18  ;;  %v907_v37 = vadd.f32 %v875_v21, %v715_v45 }
 0x18d   : > { %v1348_v59 = vpop.eup %1347  ;;  %v915_v35 = vadd.f32 %v883_v40, %v723_v50  ;;  %v714_v25 = vmul.f32 7.5, %v1346_v44  ;;  %v931_v27 = vpack.c.bf16 %v914_v46, %v912_v33  ;;  %v869_v39 = vmul.f32 -6.5, %v1828_v23 }
 0x18e   : > { %v1350_v62 = vpop.eup %1349  ;;  %v874_v36 = vmul.f32 -6.5, %v1348_v59  ;;  %v908_v1 = vadd.f32 %v876_v3, %v716_v28  ;;  %v905_v56 = vadd.f32 %v873_v20, %v713_v43  ;;  %v707_v45 = vmul.f32 7.5, %v1818_v60 }
 0x18f   : > { %v1352_v49 = vpop.eup %1351  ;;  %v932_v26 = vpack.c.bf16 %v915_v35, %v913_v47  ;;  %v712_v50 = vmul.f32 7.5, %v1350_v62  ;;  %v867_v58 = vmul.f32 -6.5, %v1822_v2  ;;  %v903_v59 = vadd.f32 %v871_v57, %v711_v22 }
 0x190   : > { %v1354_v52 = vpop.eup %1353  ;;  %v872_v51 = vmul.f32 -6.5, %v1352_v49  ;;  %v929_v44 = vpack.c.bf16 %v910_v38, %v908_v1  ;;  %v906_v31 = vadd.f32 %v874_v36, %v714_v25  ;;  %v928_v46 = vpack.c.bf16 %v907_v37, %v905_v56 }
 0x191   : > { %v1356_v41 = vpop.eup %1355  ;;  %939 = vmatprep.subr.bf16.mxu1 %v932_v26  ;;  %v710_v40 = vmul.f32 7.5, %v1354_v52  ;;  %v705_v23 = vmul.f32 7.5, %v1812_v48  ;;  %v865_v55 = vmul.f32 -6.5, %v1816_v15  ;;  %v901_v62 = vadd.f32 %v869_v39, %v709_v42  ;;  %v916_v42 = vld [vmem:[%s1957_s4] sm:$0x3] }
 0x192   : > { %v1358_v53 = vpop.eup %1357  ;;  %940 = vmatpush1.bf16.msra.mxu1 %v931_v27  ;;  %v870_v29 = vmul.f32 -6.5, %v1356_v41  ;;  %v904_v8 = vadd.f32 %v872_v51, %v712_v50  ;;  %v703_v2 = vmul.f32 7.5, %v1804_v14  ;;  %v863_v43 = vmul.f32 -6.5, %v1806_v5 }
 0x193   : > { %v1360_v10 = vpop.eup %1359  ;;  %941 = vmatprep.subr.bf16.mxu1 %v930_v34  ;;  %v708_v21 = vmul.f32 7.5, %v1358_v53  ;;  %v926_v20 = vpack.c.bf16 %v903_v59, %v901_v62  ;;  %v899_v26 = vadd.f32 %v867_v58, %v707_v45  ;;  %v704_v18 = vmul.f32 7.5, %v1810_v24 }
 0x194   : > { %v1362_v0 = vpop.eup %1361  ;;  %v868_v47 = vmul.f32 -6.5, %v1360_v10  ;;  %v927_v49 = vpack.c.bf16 %v906_v31, %v904_v8  ;;  %v902_v60 = vadd.f32 %v870_v29, %v710_v40  ;;  %v701_v15 = vmul.f32 7.5, %v1795_v63 }
 0x195   : > { %v1364_v30 = vpop.eup %1363  ;;  %v706_v3 = vmul.f32 7.5, %v1362_v0  ;;  %v861_v36 = vmul.f32 -6.5, %v1799_v61  ;;  %v897_v27 = vadd.f32 %v865_v55, %v705_v23  ;;  %v702_v38 = vmul.f32 7.5, %v1801_v7 }
 0x196   : > { %942 = vmatpush1.bf16.msra.mxu1 %v929_v44  ;;  %v1366_v35 = vpop.eup %1365  ;;  %v866_v33 = vmul.f32 -6.5, %v1364_v30  ;;  %v900_v48 = vadd.f32 %v868_v47, %v708_v21  ;;  %v895_v57 = vadd.f32 %v863_v43, %v703_v2  ;;  %v700_v34 = vmul.f32 7.5, %v1789_v32 }
 0x197   : > { %943 = vmatprep.subr.bf16.mxu1 %v928_v46  ;;  %v1368_v28 = vpop.eup %1367  ;;  %v864_v52 = vmul.f32 -6.5, %v1366_v35  ;;  %v924_v5 = vpack.c.bf16 %v899_v26, %v897_v27  ;;  %v893_v53 = vadd.f32 %v861_v36, %v701_v15  ;;  %v1964_v32 = vpack.c.bf16 %v1763_v6, %v1761_v4 }
 0x198   : > { %v1370_v25 = vpop.eup %1369  ;;  %v862_v41 = vmul.f32 -6.5, %v1368_v28  ;;  %v925_v14 = vpack.c.bf16 %v902_v60, %v900_v48  ;;  %v898_v22 = vadd.f32 %v866_v33, %v706_v3  ;;  %v1965_v1 = vpack.c.bf16 %v1745_v17, %v1743_v16 }
 0x199   : > { %v860_v24 = vmul.f32 -6.5, %v1370_v25  ;;  %v896_v37 = vadd.f32 %v864_v52, %v704_v18  ;;  %v922_v50 = vpack.c.bf16 %v895_v57, %v893_v53  ;;  %v1966_v10 = vpack.c.bf16 %v1741_v12, %v1739_v11 }
 0x19a   : > { %944 = vmatpush1.bf16.msra.mxu1 %v927_v49  ;;  %v894_v61 = vadd.f32 %v862_v41, %v702_v38  ;;  %v980_v6 = vstv %s323_s12 }
 0x19b   : > { %945 = vmatprep.subr.bf16.mxu1 %v926_v20  ;;  %v923_v63 = vpack.c.bf16 %v898_v22, %v896_v37  ;;  %v892_v51 = vadd.f32 %v860_v24, %v700_v34 }
 0x19d   : > { %v921_v7 = vpack.c.bf16 %v894_v61, %v892_v51 }
 0x19e   : > { %946 = vmatpush1.bf16.msra.mxu1 %v925_v14 }
 0x19f   : > { %947 = vmatprep.subr.bf16.mxu1 %v924_v5 }
 0x1a2   : > { %948 = vmatpush1.bf16.msra.mxu1 %v923_v63 }
 0x1a3   : > { %949 = vmatprep.subr.bf16.mxu1 %v922_v50 }
 0x1a6   : > { %950 = vmatpush1.bf16.msra.mxu1 %v921_v7 }
 0x1a7   : > { %951 = vmatprep.subr.bf16.mxu1 %v920_v54 }
 0x1aa   : > { %952 = vmatpush1.bf16.msra.mxu1 %v1964_v32 }
 0x1ab   : > { %953 = vmatprep.subr.bf16.mxu1 %v1965_v1 }
 0x1ae   : > { %954 = vmatpush1.bf16.msra.mxu1 %v1966_v10 }
 0x1b1   : > { %972 = vmatmul.mubr.bf16.vlgmr.msra.gmra.mxu1 %v916_v42 }
 0x271   : > { %v973_v13 = vpop.f32.mrf.mxu1 }
 0x272   : > { %v974_v4 = vadd.f32 %v973_v13, %v937_v9 }
 0x273   : > { %v975_v54 = vpop.f32.mrf.mxu1 }
 0x274   : > { %v976_v16 = vadd.f32 %v975_v54, %v937_v9  ;;  %v981_v39 = vmul.f32 %v980_v6, %v974_v4 }
 0x275   : > { %v977_v17 = vpop.f32.mrf.mxu1 }
 0x276   : > { %v982_v11 = vmul.f32 %v980_v6, %v976_v16 }
 0x277   : > { %v978_v12 = vpop.f32.mrf.mxu1 }
 0x278   : > { %v985_v56 = vcombine.low %v981_v39, %v982_v11 }
 0x27a   : > { %v987_v0 = vadd.f32 %v985_v56, %v1634_v19 }
 0x27c   : > { %988 = vst [vmem:[%s298_s15] sm:$0xff] %v987_v0 }
 0x27d   : > { %1399 = shalt.err (!%p1396_p3)
}
 0x27e   : > { %s1400_s8 = scalar_lea.hbm %s1004_s18, 128  ;;  %s1404_s13 = scalar_lea.hbm %s1959_s6, 256 }
 0x27f   : > { %p1401_p5 = scmp.ne.s32.totalorder %s1004_s18, %s1400_s8  ;;  %p1405_p9 = scmp.lt.s32.totalorder %s1004_s18, %s1959_s6 }
 0x280   : > { %p1406_p12 = scmp.lt.s32.totalorder %s1404_s13, %s1400_s8 }
 0x281   : > { %p1402_p6 = pnand %p1401_p5, %p1547_p4 }
 0x282   : > { %p1407_p10 = por %p1406_p12, %p1405_p9 }
 0x283   : > { %p1403_p7 = pneg %p1402_p6 }
 0x285   : > { %p1408_p11 = pnand %p1407_p10, %p1403_p7 }
 0x287   : > { %1411 = shalt.err (!%p1408_p11)
}
 0x288   : > { %1149 = dma.vmem_to_hbm [thread:$0]  (%p1547_p4), %s1007_s16, 128, %s1004_s18, %s990_s20  }
 0x289 PF: > { %p1161_p13 = scmp.ge.s32.totalorder %s1466_s26, 2  ;;  %s1018_s17 = sand.u32 1, %s1446_s21  }
 0x28a   : > { %s1019_s19 = scalar_lea.sflag [#allocation3], %s1018_s17 }
 0x28b   : > { %p1156_p0 = pnand %p1161_p13, %p1554_p8 }
 0x28d   : > { %p1157_p1 = pneg %p1156_p0 }
 0x28f   : > { %1441 = dma.done.wait (%p1157_p1), %s1019_s19, 128  }
 0x290   : > { %1443 = vsyncadd (%p1157_p1), %s1019_s19, 4294967168  ;;  %s20_s26 = sadd.s32 1, %s1466_s26   ;;  %s1967_s21 = smov %s1450_s22 }
 0x291   : > { %p17_p2 = scmp.ge.s32.totalorder %s20_s26, 4   ;;  %s1968_s22 = smov %s1454_s23 }
 0x292   : > { %s1969_s23 = smov %s1560_s10  ;;  %s1970_s24 = smov %s1462_s25 }
 0x293   : > { %s1971_s25 = smov %s1973_s29  ;;  %19 = sbr.rel (!%p17_p2) target bundleno = 5 (0x5), region = 87 }
 0x298   :  { %1024 = vsyncpa [#allocation3], 1 }
 0x299   :  { %1026 = vsyncpa [#allocation3 + $0x1], 1 }
 0x29a   :  { %1027 = vsyncpa [#allocation4], 1 }
 0x29b   :  { %1029 = vsyncpa [#allocation4 + $0x1], 1 }

</bundles_post_ra>
